<compile_context>
chip_gen: v6e
topology: v6e:2x2x1
jax: 0.10.0
libtpu: 0.0.40
codegen_flags: <defaults>
</compile_context>

<pallas_src>
import functools

import jax
import jax.numpy as jnp
from jax.experimental import pallas as pl
from jax.experimental.pallas import tpu as pltpu


_VMEM_LIMIT = 64 * 1024 * 1024   # full v7x VMEM; raise to 128 MiB on v5e/v6e

# pl.reciprocal puts the divide on the otherwise-idle EUP slot; fall back to a
# plain divide on JAX versions that do not export it.
_PL_RECIPROCAL = getattr(pl, "reciprocal", None)


def _approx_recip(x):
    if _PL_RECIPROCAL is not None:
        return _PL_RECIPROCAL(x, approx=True)
    return 1.0 / x


def _stable_softplus(x):
    return jnp.where(x > 20.0, x, jnp.log(1.0 + jnp.exp(jnp.minimum(x, 20.0))))


def _sigmoid(x):
    # 1/(1+exp(-x)) is NaN-free in f32; reciprocal lands on the EUP slot.
    return _approx_recip(1.0 + jnp.exp(-x))


def _bf16(x):
    return x.astype(jnp.bfloat16)


def _pick_batch_tile(batch, max_tile=256):
    """Largest multiple-of-8 divisor of `batch` <= max_tile; for large batches
    force >= 2 blocks so the 'parallel' axis can shard across both v7x cores."""
    candidates = [bt for bt in range(8, min(batch, max_tile) + 1, 8)
                  if batch % bt == 0]
    if not candidates:
        return batch                      # tiny / odd batch: one full block
    bt = max(candidates)
    if bt == batch and batch >= 128:
        halves = [c for c in candidates if c <= batch // 2]
        if halves:
            bt = max(halves)
    return bt


# -----------------------------------------------------------------------------
# Kernel 1: fused encoder (noisy + clean) -> _enc_mu -> z / z0, soft_assign(z0)
# -----------------------------------------------------------------------------
def _encoder_cluster_kernel(x_ref, noise_ref, *refs, n_layers, sigma, alpha):
    nw = 2 * n_layers
    enc = refs[:nw]
    w_mu_ref, b_mu_ref, mu_t_ref = refs[nw], refs[nw + 1], refs[nw + 2]
    z_ref, z0_ref, q_ref = refs[nw + 3], refs[nw + 4], refs[nw + 5]

    bt = x_ref.shape[0]
    x = x_ref[...]

    # Layer 1: two dots against the same resident bf16 w0 (noise add folded in)
    w0 = enc[0][...]
    b0 = enc[1][...]
    h_noisy = jnp.maximum(
        jnp.dot(_bf16(x + sigma * noise_ref[...]), w0,
                preferred_element_type=jnp.float32) + b0, 0.0)
    h_clean = jnp.maximum(
        jnp.dot(_bf16(x), w0, preferred_element_type=jnp.float32) + b0, 0.0)

    # Remaining layers run noisy+clean as one (2B, hidden) matmul chain.
    h = jnp.concatenate([h_noisy, h_clean], axis=0)           # (2B, hidden0)
    for i in range(1, n_layers):
        h = jnp.maximum(
            jnp.dot(_bf16(h), enc[2 * i][...],
                    preferred_element_type=jnp.float32) + enc[2 * i + 1][...],
            0.0)
    z_all = (jnp.dot(_bf16(h), w_mu_ref[...],
                     preferred_element_type=jnp.float32) + b_mu_ref[...])
    z_noisy = z_all[:bt]          # bt is a multiple of 8 -> aligned split
    z_clean = z_all[bt:]
    z_ref[...] = z_noisy.astype(z_ref.dtype)
    z0_ref[...] = z_clean.astype(z0_ref.dtype)

    # soft_assign(z0): mu pre-transposed (z_dim, K) -> pure MXU cross term.
    mu_t = mu_t_ref[...]
    z2 = jnp.sum(z_clean * z_clean, axis=1, keepdims=True)     # (B, 1)
    m2 = jnp.sum(mu_t * mu_t, axis=0, keepdims=True)           # (1, K)
    cross = jnp.dot(z_clean, mu_t, preferred_element_type=jnp.float32)
    dist2 = jnp.maximum(z2 + m2 - 2.0 * cross, 0.0)   # clamp f32 cancellation
    q = 1.0 / (1.0 + dist2 * (1.0 / alpha))
    power = (alpha + 1.0) / 2.0
    if power != 1.0:               # statically skip pow() for the alpha=1 case
        q = q ** power
    q = q * _approx_recip(jnp.sum(q, axis=1, keepdims=True))
    q_ref[...] = q.astype(q_ref.dtype)


def encoder_cluster(x, noise, enc_params, enc_mu, mu_t, sigma, alpha,
                    batch_tile=None):
    B, in_dim = x.shape
    z_dim = enc_mu[0].shape[1]
    K = mu_t.shape[1]
    n_layers = len(enc_params)
    bt = _pick_batch_tile(B) if batch_tile is None else batch_tile
    assert B % bt == 0

    # Weights go in as bf16 (halve HBM/VMEM, native MXU path); biases / mu
    # stay f32 for the accumulate / epilogue.
    flat_w = []
    for w, b in enc_params:
        flat_w += [_bf16(w), b]
    flat_w += [_bf16(enc_mu[0]), enc_mu[1], mu_t]

    def batch_spec(d):
        return pl.BlockSpec((bt, d), lambda i: (i, 0))

    def resident_spec(a):
        # TODO(synk): pipeline_mode=pl.Buffered(1) for grid-invariant blocks.
        return pl.BlockSpec(a.shape, lambda i: (0, 0))

    in_specs = ([batch_spec(in_dim), batch_spec(in_dim)]
                + [resident_spec(a) for a in flat_w])
    out_specs = (batch_spec(z_dim), batch_spec(z_dim), batch_spec(K))
    out_shape = (jax.ShapeDtypeStruct((B, z_dim), jnp.float32),
                 jax.ShapeDtypeStruct((B, z_dim), jnp.float32),
                 jax.ShapeDtypeStruct((B, K), jnp.float32))

    dims = [in_dim] + [w.shape[1] for w, _ in enc_params] + [z_dim]
    flops = sum(2 * (2 * B) * a * b for a, b in zip(dims[:-1], dims[1:]))
    flops += 2 * B * z_dim * K
    bytes_accessed = (2 * B * in_dim * 4
                      + sum(int(a.size) * a.dtype.itemsize for a in flat_w)
                      + B * (2 * z_dim + K) * 4)
    cost = pl.CostEstimate(flops=int(flops), transcendentals=0,
                           bytes_accessed=int(bytes_accessed))

    kernel = functools.partial(_encoder_cluster_kernel,
                               n_layers=n_layers, sigma=sigma, alpha=alpha)
    return pl.pallas_call(
        kernel,
        grid=(B // bt,),
        in_specs=in_specs,
        out_specs=out_specs,
        out_shape=out_shape,
        cost_estimate=cost,
        compiler_params=pltpu.CompilerParams(
            dimension_semantics=("parallel",),
            vmem_limit_bytes=_VMEM_LIMIT),
    )(x, noise, *flat_w)


# -----------------------------------------------------------------------------
# Kernel 2: decoder + decoder1 + mix (scratch-carried) + per-head activations
# -----------------------------------------------------------------------------
def _decoder_heads_kernel(z_ref, *refs, n_layers):
    nw = 2 * n_layers
    dec = refs[:nw]
    dec1 = refs[nw:2 * nw]
    w_m, b_m, w_d, b_d, w_p, b_p = refs[2 * nw:2 * nw + 6]
    mean_ref, disp_ref, pi_ref = refs[2 * nw + 6:2 * nw + 9]
    h_scr = refs[2 * nw + 9]

    # Decoder stacks depend only on the batch block: compute once (first head
    # column block), keep the mixed hidden state resident in VMEM scratch.
    @pl.when(pl.program_id(1) == 0)
    def _():
        z = z_ref[...]
        hd = z
        hd1 = z
        for i in range(n_layers):
            hd = jnp.maximum(
                jnp.dot(_bf16(hd), dec[2 * i][...],
                        preferred_element_type=jnp.float32)
                + dec[2 * i + 1][...], 0.0)
            hd1 = jnp.maximum(
                jnp.dot(_bf16(hd1), dec1[2 * i][...],
                        preferred_element_type=jnp.float32)
                + dec1[2 * i + 1][...], 0.0)
        h_scr[...] = 0.5 * (hd + hd1)

    h = _bf16(h_scr[...])
    y_m = jnp.dot(h, w_m[...], preferred_element_type=jnp.float32) + b_m[...]
    y_d = jnp.dot(h, w_d[...], preferred_element_type=jnp.float32) + b_d[...]
    y_p = jnp.dot(h, w_p[...], preferred_element_type=jnp.float32) + b_p[...]
    mean_ref[...] = jnp.clip(jnp.exp(y_m), 1e-5, 1e6).astype(mean_ref.dtype)
    disp_ref[...] = jnp.clip(_stable_softplus(y_d),
                             1e-4, 1e4).astype(disp_ref.dtype)
    pi_ref[...] = _sigmoid(y_p).astype(pi_ref.dtype)


def decoder_heads(z, dec_params, dec1_params, head_params, batch_tile=None):
    B, z_dim = z.shape
    n_layers = len(dec_params)
    (w_m, b_m), (w_d, b_d), (w_p, b_p) = head_params
    dec_last, input_dim = w_m.shape
    bt = _pick_batch_tile(B) if batch_tile is None else batch_tile
    assert B % bt == 0

    # Head-column tiling: lane-aligned <=2048-wide blocks when input_dim is a
    # multiple of 128 (streams the big head weights / outputs through VMEM);
    # otherwise one full-width block (demo-sized models).
    tn = input_dim
    for cand in (2048, 1024, 512, 256, 128):
        if input_dim % cand == 0:
            tn = cand
            break
    n_col_blocks = input_dim // tn

    flat_w = []
    for w, b in dec_params:
        flat_w += [_bf16(w), b]
    for w, b in dec1_params:
        flat_w += [_bf16(w), b]
    heads_w = [_bf16(w_m), b_m, _bf16(w_d), b_d, _bf16(w_p), b_p]

    z_spec = pl.BlockSpec((bt, z_dim), lambda i, j: (i, 0))
    # TODO(synk): pipeline_mode=pl.Buffered(1) for these grid-invariant blocks.
    dec_specs = [pl.BlockSpec(a.shape, lambda i, j: (0, 0)) for a in flat_w]
    head_w_spec = pl.BlockSpec((dec_last, tn), lambda i, j: (0, j))
    head_b_spec = pl.BlockSpec((1, tn), lambda i, j: (0, j))
    head_specs = [head_w_spec, head_b_spec] * 3
    out_spec = pl.BlockSpec((bt, tn), lambda i, j: (i, j))
    out_shape = tuple(jax.ShapeDtypeStruct((B, input_dim), jnp.float32)
                      for _ in range(3))

    dims = [z_dim] + [w.shape[1] for w, _ in dec_params]
    flops = 2 * sum(2 * B * a * b for a, b in zip(dims[:-1], dims[1:]))
    flops += 3 * 2 * B * dec_last * input_dim
    bytes_accessed = (B * z_dim * 4
                      + sum(int(a.size) * a.dtype.itemsize
                            for a in flat_w + heads_w)
                      + 3 * B * input_dim * 4)
    cost = pl.CostEstimate(flops=int(flops),
                           transcendentals=int(4 * B * input_dim),
                           bytes_accessed=int(bytes_accessed))

    kernel = functools.partial(_decoder_heads_kernel, n_layers=n_layers)
    return pl.pallas_call(
        kernel,
        grid=(B // bt, n_col_blocks),
        in_specs=[z_spec] + dec_specs + head_specs,
        out_specs=(out_spec, out_spec, out_spec),
        out_shape=out_shape,
        scratch_shapes=[pltpu.VMEM((bt, dec_last), jnp.float32)],
        cost_estimate=cost,
        compiler_params=pltpu.CompilerParams(
            dimension_semantics=("parallel", "arbitrary"),
            vmem_limit_bytes=_VMEM_LIMIT),
    )(z, *flat_w, *heads_w)


# -----------------------------------------------------------------------------
# Parameters + forward pass (mirrors MyModel.forward)
# -----------------------------------------------------------------------------
def _init_linear(key, in_dim, out_dim):
    """Deterministic PyTorch-Linear-like init: U(-1/sqrt(in), 1/sqrt(in))."""
    kw, kb = jax.random.split(key)
    bound = 1.0 / jnp.sqrt(jnp.float32(in_dim))
    w = jax.random.uniform(kw, (in_dim, out_dim), jnp.float32, -bound, bound)
    b = jax.random.uniform(kb, (1, out_dim), jnp.float32, -bound, bound)
    return w, b


def init_params(key, input_dim, z_dim, n_clusters, encode_layers, decode_layers):
    keys = jax.random.split(key, 16)
    ki = iter(keys)

    def mlp(dims):
        return [_init_linear(next(ki), dims[i - 1], dims[i])
                for i in range(1, len(dims))]

    params = {
        "encoder": mlp([input_dim] + encode_layers),
        "decoder": mlp([z_dim] + decode_layers),
        "decoder1": mlp([z_dim] + decode_layers),
        "enc_mu": _init_linear(next(ki), encode_layers[-1], z_dim),
        "dec_heads": (_init_linear(next(ki), decode_layers[-1], input_dim),
                      _init_linear(next(ki), decode_layers[-1], input_dim),
                      _init_linear(next(ki), decode_layers[-1], input_dim)),
        # self.mu in torch is (n_clusters, z_dim) filled by kmeans; stored here
        # pre-transposed (z_dim, K) so soft_assign's cross term is a plain MXU
        # matmul with no per-call transpose.
        "mu_t": jax.random.normal(next(ki), (z_dim, n_clusters), jnp.float32),
    }
    return params


def forward(params, x, noise, sigma=1.0, alpha=1.0):
    """Replicates MyModel.forward (`noise` stands in for torch.randn_like(x))."""
    z, z0, q = encoder_cluster(x, noise, params["encoder"], params["enc_mu"],
                               params["mu_t"], sigma, alpha)
    _mean, _disp, _pi = decoder_heads(z, params["decoder"], params["decoder1"],
                                      params["dec_heads"])
    return z0, q, _mean, _disp, _pi


# -----------------------------------------------------------------------------
# Pure-JAX reference (same bf16-operand / f32-accumulate matmul recipe)
# -----------------------------------------------------------------------------
def forward_ref(params, x, noise, sigma=1.0, alpha=1.0):
    def mm(a, w):
        return jnp.dot(a.astype(jnp.bfloat16), w.astype(jnp.bfloat16),
                       preferred_element_type=jnp.float32)

    relu = lambda v: jnp.maximum(v, 0.0)
    h = x + noise * sigma
    for w, b in params["encoder"]:
        h = relu(mm(h, w) + b)
    z = mm(h, params["enc_mu"][0]) + params["enc_mu"][1]
    hd = z
    for w, b in params["decoder"]:
        hd = relu(mm(hd, w) + b)
    hd1 = z
    for w, b in params["decoder1"]:
        hd1 = relu(mm(hd1, w) + b)
    hm = 0.5 * (hd1 + hd)
    (w_m, b_m), (w_d, b_d), (w_p, b_p) = params["dec_heads"]
    _mean = jnp.clip(jnp.exp(mm(hm, w_m) + b_m), 1e-5, 1e6)
    _disp = jnp.clip(jax.nn.softplus(mm(hm, w_d) + b_d), 1e-4, 1e4)
    _pi = jax.nn.sigmoid(mm(hm, w_p) + b_p)
    h0 = x
    for w, b in params["encoder"]:
        h0 = relu(mm(h0, w) + b)
    z0 = mm(h0, params["enc_mu"][0]) + params["enc_mu"][1]
    mu = params["mu_t"].T
    dist2 = jnp.sum((z0[:, None, :] - mu[None, :, :]) ** 2, axis=2)
    q = 1.0 / (1.0 + dist2 / alpha)
    q = q ** ((alpha + 1.0) / 2.0)
    q = q / jnp.sum(q, axis=1, keepdims=True)
    return z0, q, _mean, _disp, _pi


# -----------------------------------------------------------------------------
# Demo
# -----------------------------------------------------------------------------
if __name__ == "__main__":
    batch = 8
    input_dim = 32
    encode_layers = [64, 32]
    z_dim = 16
    decode_layers = [32, 64]
    n_clusters = 4
    sigma = 1.0
    alpha = 1.0

    key = jax.random.PRNGKey(0)
    kp, kx, kn = jax.random.split(key, 3)

    params = init_params(kp, input_dim, z_dim, n_clusters,
                         encode_layers, decode_layers)
    x = jax.random.normal(kx, (batch, input_dim), jnp.float32)
    noise = jax.random.normal(kn, (batch, input_dim), jnp.float32)

    fwd = jax.jit(functools.partial(forward, sigma=sigma, alpha=alpha))
    z0, q, _mean, _disp, _pi = fwd(params, x, noise)
    jax.block_until_ready((z0, q, _mean, _disp, _pi))

    # Shape checks (mirror MyModel.forward outputs).
    assert z0.shape == (batch, z_dim)
    assert q.shape == (batch, n_clusters)
    assert _mean.shape == (batch, input_dim)
    assert _disp.shape == (batch, input_dim)
    assert _pi.shape == (batch, input_dim)
    # q rows sum to 1 (approx reciprocal in kernel -> loose atol).
    assert jnp.allclose(jnp.sum(q, axis=1), 1.0, atol=1e-2)

    # Numerical sanity check vs. plain-JAX reference (loose tolerance to absorb
    # bf16 MXU vs. XLA accumulation-order differences).
    rz0, rq, rmean, rdisp, rpi = forward_ref(params, x, noise, sigma, alpha)
    for a, b in [(z0, rz0), (q, rq), (_mean, rmean), (_disp, rdisp), (_pi, rpi)]:
        assert jnp.allclose(a, b, rtol=5e-2, atol=5e-2), "kernel/ref mismatch"

    print("KERNEL_OK")
</pallas_src>

<mosaic_0001>
module attributes {stable_mosaic.version = 11 : i64} {
  func.func @_encoder_cluster_kernel(%arg0: i32, %arg1: memref<8x32xf32, #tpu.memory_space<vmem>>, %arg2: memref<8x32xf32, #tpu.memory_space<vmem>>, %arg3: memref<32x64xbf16, #tpu.memory_space<vmem>>, %arg4: memref<1x64xf32, #tpu.memory_space<vmem>>, %arg5: memref<64x32xbf16, #tpu.memory_space<vmem>>, %arg6: memref<1x32xf32, #tpu.memory_space<vmem>>, %arg7: memref<32x16xbf16, #tpu.memory_space<vmem>>, %arg8: memref<1x16xf32, #tpu.memory_space<vmem>>, %arg9: memref<16x4xf32, #tpu.memory_space<vmem>>, %arg10: memref<8x16xf32, #tpu.memory_space<vmem>>, %arg11: memref<8x16xf32, #tpu.memory_space<vmem>>, %arg12: memref<8x4xf32, #tpu.memory_space<vmem>>) attributes {dimension_semantics = [#tpu.dimension_semantics<parallel>], iteration_bounds = array<i64: 1>, scalar_prefetch = 0 : i64, scratch_operands = 0 : i64, tpu.core_type = #tpu.core_type<tc>, window_params = [{transform_indices = @transform_0, window_bounds = array<i64: 8, 32>}, {transform_indices = @transform_1, window_bounds = array<i64: 8, 32>}, {pipeline_mode = #tpu.pipeline_mode<synchronous>, transform_indices = @transform_2, window_bounds = array<i64: 32, 64>}, {pipeline_mode = #tpu.pipeline_mode<synchronous>, transform_indices = @transform_3, window_bounds = array<i64: 1, 64>}, {pipeline_mode = #tpu.pipeline_mode<synchronous>, transform_indices = @transform_4, window_bounds = array<i64: 64, 32>}, {pipeline_mode = #tpu.pipeline_mode<synchronous>, transform_indices = @transform_5, window_bounds = array<i64: 1, 32>}, {pipeline_mode = #tpu.pipeline_mode<synchronous>, transform_indices = @transform_6, window_bounds = array<i64: 32, 16>}, {pipeline_mode = #tpu.pipeline_mode<synchronous>, transform_indices = @transform_7, window_bounds = array<i64: 1, 16>}, {pipeline_mode = #tpu.pipeline_mode<synchronous>, transform_indices = @transform_8, window_bounds = array<i64: 16, 4>}, {transform_indices = @transform_9, window_bounds = array<i64: 8, 16>}, {transform_indices = @transform_10, window_bounds = array<i64: 8, 16>}, {transform_indices = @transform_11, window_bounds = array<i64: 8, 4>}]} {
    %c0 = arith.constant 0 : index
    %c0_0 = arith.constant 0 : index
    %0 = vector.load %arg1[%c0, %c0_0] : memref<8x32xf32, #tpu.memory_space<vmem>>, vector<8x32xf32>
    %c0_1 = arith.constant 0 : index
    %c0_2 = arith.constant 0 : index
    %1 = vector.load %arg3[%c0_1, %c0_2] : memref<32x64xbf16, #tpu.memory_space<vmem>>, vector<32x64xbf16>
    %c0_3 = arith.constant 0 : index
    %c0_4 = arith.constant 0 : index
    %2 = vector.load %arg4[%c0_3, %c0_4] : memref<1x64xf32, #tpu.memory_space<vmem>>, vector<1x64xf32>
    %c0_5 = arith.constant 0 : index
    %c0_6 = arith.constant 0 : index
    %3 = vector.load %arg2[%c0_5, %c0_6] : memref<8x32xf32, #tpu.memory_space<vmem>>, vector<8x32xf32>
    %cst = arith.constant 1.000000e+00 : f32
    %4 = vector.broadcast %cst : f32 to vector<8x32xf32>
    %5 = arith.mulf %4, %3 : vector<8x32xf32>
    %6 = arith.addf %0, %5 : vector<8x32xf32>
    %7 = arith.truncf %6 : vector<8x32xf32> to vector<8x32xbf16>
    %cst_7 = arith.constant dense<0.000000e+00> : vector<8x64xf32>
    %8 = tpu.matmul %7, %1, %cst_7 {dimension_numbers = #tpu.dot_dimension_numbers<[1], [0], [0], [1], [0, 0, 1, 1], [], []>} : vector<8x32xbf16>, vector<32x64xbf16>, vector<8x64xf32> -> vector<8x64xf32>
    %9 = vector.broadcast %2 : vector<1x64xf32> to vector<8x64xf32>
    %10 = arith.addf %8, %9 : vector<8x64xf32>
    %cst_8 = arith.constant 0.000000e+00 : f32
    %11 = vector.broadcast %cst_8 : f32 to vector<8x64xf32>
    %12 = arith.maximumf %10, %11 : vector<8x64xf32>
    %13 = arith.truncf %0 : vector<8x32xf32> to vector<8x32xbf16>
    %cst_9 = arith.constant dense<0.000000e+00> : vector<8x64xf32>
    %14 = tpu.matmul %13, %1, %cst_9 {dimension_numbers = #tpu.dot_dimension_numbers<[1], [0], [0], [1], [0, 0, 1, 1], [], []>} : vector<8x32xbf16>, vector<32x64xbf16>, vector<8x64xf32> -> vector<8x64xf32>
    %15 = vector.broadcast %2 : vector<1x64xf32> to vector<8x64xf32>
    %16 = arith.addf %14, %15 : vector<8x64xf32>
    %cst_10 = arith.constant 0.000000e+00 : f32
    %17 = vector.broadcast %cst_10 : f32 to vector<8x64xf32>
    %18 = arith.maximumf %16, %17 : vector<8x64xf32>
    %19 = tpu.concatenate %12, %18 in 0 : vector<8x64xf32>, vector<8x64xf32> -> vector<16x64xf32>
    %20 = arith.truncf %19 : vector<16x64xf32> to vector<16x64xbf16>
    %c0_11 = arith.constant 0 : index
    %c0_12 = arith.constant 0 : index
    %21 = vector.load %arg5[%c0_11, %c0_12] : memref<64x32xbf16, #tpu.memory_space<vmem>>, vector<64x32xbf16>
    %cst_13 = arith.constant dense<0.000000e+00> : vector<16x32xf32>
    %22 = tpu.matmul %20, %21, %cst_13 {dimension_numbers = #tpu.dot_dimension_numbers<[1], [0], [0], [1], [0, 0, 1, 1], [], []>} : vector<16x64xbf16>, vector<64x32xbf16>, vector<16x32xf32> -> vector<16x32xf32>
    %c0_14 = arith.constant 0 : index
    %c0_15 = arith.constant 0 : index
    %23 = vector.load %arg6[%c0_14, %c0_15] : memref<1x32xf32, #tpu.memory_space<vmem>>, vector<1x32xf32>
    %24 = vector.broadcast %23 : vector<1x32xf32> to vector<16x32xf32>
    %25 = arith.addf %22, %24 : vector<16x32xf32>
    %cst_16 = arith.constant 0.000000e+00 : f32
    %26 = vector.broadcast %cst_16 : f32 to vector<16x32xf32>
    %27 = arith.maximumf %25, %26 : vector<16x32xf32>
    %28 = arith.truncf %27 : vector<16x32xf32> to vector<16x32xbf16>
    %c0_17 = arith.constant 0 : index
    %c0_18 = arith.constant 0 : index
    %29 = vector.load %arg7[%c0_17, %c0_18] : memref<32x16xbf16, #tpu.memory_space<vmem>>, vector<32x16xbf16>
    %cst_19 = arith.constant dense<0.000000e+00> : vector<16x16xf32>
    %30 = tpu.matmul %28, %29, %cst_19 {dimension_numbers = #tpu.dot_dimension_numbers<[1], [0], [0], [1], [0, 0, 1, 1], [], []>} : vector<16x32xbf16>, vector<32x16xbf16>, vector<16x16xf32> -> vector<16x16xf32>
    %c0_20 = arith.constant 0 : index
    %c0_21 = arith.constant 0 : index
    %31 = vector.load %arg8[%c0_20, %c0_21] : memref<1x16xf32, #tpu.memory_space<vmem>>, vector<1x16xf32>
    %32 = vector.broadcast %31 : vector<1x16xf32> to vector<16x16xf32>
    %33 = arith.addf %30, %32 : vector<16x16xf32>
    %34 = vector.extract_strided_slice %33 {offsets = [0, 0], sizes = [8, 16], strides = [1, 1]} : vector<16x16xf32> to vector<8x16xf32>
    %35 = vector.extract_strided_slice %33 {offsets = [8, 0], sizes = [8, 16], strides = [1, 1]} : vector<16x16xf32> to vector<8x16xf32>
    %c0_22 = arith.constant 0 : index
    %c0_23 = arith.constant 0 : index
    %36 = vector.load %arg10[%c0_22, %c0_23] : memref<8x16xf32, #tpu.memory_space<vmem>>, vector<8x16xf32>
    tpu.vector_store %arg10[%c0_22, %c0_23], %34 {strides = array<i32>} : memref<8x16xf32, #tpu.memory_space<vmem>>, vector<8x16xf32>,
    %c0_24 = arith.constant 0 : index
    %c0_25 = arith.constant 0 : index
    %37 = vector.load %arg11[%c0_24, %c0_25] : memref<8x16xf32, #tpu.memory_space<vmem>>, vector<8x16xf32>
    tpu.vector_store %arg11[%c0_24, %c0_25], %35 {strides = array<i32>} : memref<8x16xf32, #tpu.memory_space<vmem>>, vector<8x16xf32>,
    %c0_26 = arith.constant 0 : index
    %c0_27 = arith.constant 0 : index
    %38 = vector.load %arg9[%c0_26, %c0_27] : memref<16x4xf32, #tpu.memory_space<vmem>>, vector<16x4xf32>
    %39 = arith.mulf %35, %35 : vector<8x16xf32>
    %cst_28 = arith.constant dense<0.000000e+00> : vector<8xf32>
    %40 = vector.multi_reduction <add>, %39, %cst_28 [1] : vector<8x16xf32> to vector<8xf32>
    %41 = vector.shape_cast %40 : vector<8xf32> to vector<8x1xf32>
    %42 = arith.mulf %38, %38 : vector<16x4xf32>
    %cst_29 = arith.constant dense<0.000000e+00> : vector<4xf32>
    %43 = vector.multi_reduction <add>, %42, %cst_29 [0] : vector<16x4xf32> to vector<4xf32>
    %44 = vector.shape_cast %43 : vector<4xf32> to vector<1x4xf32>
    %cst_30 = arith.constant dense<0.000000e+00> : vector<8x4xf32>
    %45 = tpu.matmul %35, %38, %cst_30 {dimension_numbers = #tpu.dot_dimension_numbers<[1], [0], [0], [1], [0, 0, 1, 1], [], []>} : vector<8x16xf32>, vector<16x4xf32>, vector<8x4xf32> -> vector<8x4xf32>
    %46 = vector.broadcast %41 : vector<8x1xf32> to vector<8x4xf32>
    %47 = vector.broadcast %44 : vector<1x4xf32> to vector<8x4xf32>
    %48 = arith.addf %46, %47 : vector<8x4xf32>
    %cst_31 = arith.constant 2.000000e+00 : f32
    %49 = vector.broadcast %cst_31 : f32 to vector<8x4xf32>
    %50 = arith.mulf %49, %45 : vector<8x4xf32>
    %51 = arith.subf %48, %50 : vector<8x4xf32>
    %cst_32 = arith.constant 0.000000e+00 : f32
    %52 = vector.broadcast %cst_32 : f32 to vector<8x4xf32>
    %53 = arith.maximumf %51, %52 : vector<8x4xf32>
    %cst_33 = arith.constant 1.000000e+00 : f32
    %54 = vector.broadcast %cst_33 : f32 to vector<8x4xf32>
    %55 = arith.mulf %53, %54 : vector<8x4xf32>
    %cst_34 = arith.constant 1.000000e+00 : f32
    %56 = vector.broadcast %cst_34 : f32 to vector<8x4xf32>
    %57 = arith.addf %56, %55 : vector<8x4xf32>
    %cst_35 = arith.constant 1.000000e+00 : f32
    %58 = vector.broadcast %cst_35 : f32 to vector<8x4xf32>
    %59 = arith.divf %58, %57 : vector<8x4xf32>
    %cst_36 = arith.constant dense<0.000000e+00> : vector<8xf32>
    %60 = vector.multi_reduction <add>, %59, %cst_36 [1] : vector<8x4xf32> to vector<8xf32>
    %61 = vector.shape_cast %60 : vector<8xf32> to vector<8x1xf32>
    %62 = tpu.reciprocal %61 {approx = true} : vector<8x1xf32> -> vector<8x1xf32>
    %63 = vector.broadcast %62 : vector<8x1xf32> to vector<8x4xf32>
    %64 = arith.mulf %59, %63 : vector<8x4xf32>
    %c0_37 = arith.constant 0 : index
    %c0_38 = arith.constant 0 : index
    %65 = vector.load %arg12[%c0_37, %c0_38] : memref<8x4xf32, #tpu.memory_space<vmem>>, vector<8x4xf32>
    tpu.vector_store %arg12[%c0_37, %c0_38], %64 {strides = array<i32>} : memref<8x4xf32, #tpu.memory_space<vmem>>, vector<8x4xf32>,
    return
  }
  func.func @transform_0(%arg0: i32) -> (i32, i32) {
    %c0_i32 = arith.constant 0 : i32
    %c0_i32_0 = arith.constant 0 : i32
    return %arg0, %c0_i32 : i32, i32
  }
  func.func @transform_1(%arg0: i32) -> (i32, i32) {
    %c0_i32 = arith.constant 0 : i32
    %c0_i32_0 = arith.constant 0 : i32
    return %arg0, %c0_i32 : i32, i32
  }
  func.func @transform_2(%arg0: i32) -> (i32, i32) {
    %c0_i32 = arith.constant 0 : i32
    %c0_i32_0 = arith.constant 0 : i32
    %c0_i32_1 = arith.constant 0 : i32
    return %c0_i32, %c0_i32_0 : i32, i32
  }
  func.func @transform_3(%arg0: i32) -> (i32, i32) {
    %c0_i32 = arith.constant 0 : i32
    %c0_i32_0 = arith.constant 0 : i32
    %c0_i32_1 = arith.constant 0 : i32
    return %c0_i32, %c0_i32_0 : i32, i32
  }
  func.func @transform_4(%arg0: i32) -> (i32, i32) {
    %c0_i32 = arith.constant 0 : i32
    %c0_i32_0 = arith.constant 0 : i32
    %c0_i32_1 = arith.constant 0 : i32
    return %c0_i32, %c0_i32_0 : i32, i32
  }
  func.func @transform_5(%arg0: i32) -> (i32, i32) {
    %c0_i32 = arith.constant 0 : i32
    %c0_i32_0 = arith.constant 0 : i32
    %c0_i32_1 = arith.constant 0 : i32
    return %c0_i32, %c0_i32_0 : i32, i32
  }
  func.func @transform_6(%arg0: i32) -> (i32, i32) {
    %c0_i32 = arith.constant 0 : i32
    %c0_i32_0 = arith.constant 0 : i32
    %c0_i32_1 = arith.constant 0 : i32
    return %c0_i32, %c0_i32_0 : i32, i32
  }
  func.func @transform_7(%arg0: i32) -> (i32, i32) {
    %c0_i32 = arith.constant 0 : i32
    %c0_i32_0 = arith.constant 0 : i32
    %c0_i32_1 = arith.constant 0 : i32
    return %c0_i32, %c0_i32_0 : i32, i32
  }
  func.func @transform_8(%arg0: i32) -> (i32, i32) {
    %c0_i32 = arith.constant 0 : i32
    %c0_i32_0 = arith.constant 0 : i32
    %c0_i32_1 = arith.constant 0 : i32
    return %c0_i32, %c0_i32_0 : i32, i32
  }
  func.func @transform_9(%arg0: i32) -> (i32, i32) {
    %c0_i32 = arith.constant 0 : i32
    %c0_i32_0 = arith.constant 0 : i32
    return %arg0, %c0_i32 : i32, i32
  }
  func.func @transform_10(%arg0: i32) -> (i32, i32) {
    %c0_i32 = arith.constant 0 : i32
    %c0_i32_0 = arith.constant 0 : i32
    return %arg0, %c0_i32 : i32, i32
  }
  func.func @transform_11(%arg0: i32) -> (i32, i32) {
    %c0_i32 = arith.constant 0 : i32
    %c0_i32_0 = arith.constant 0 : i32
    return %arg0, %c0_i32 : i32, i32
  }
}

module attributes {stable_mosaic.version = 11 : i64} {
  func.func @_decoder_heads_kernel(%arg0: i32, %arg1: i32, %arg2: memref<8x16xf32, #tpu.memory_space<vmem>>, %arg3: memref<16x32xbf16, #tpu.memory_space<vmem>>, %arg4: memref<1x32xf32, #tpu.memory_space<vmem>>, %arg5: memref<32x64xbf16, #tpu.memory_space<vmem>>, %arg6: memref<1x64xf32, #tpu.memory_space<vmem>>, %arg7: memref<16x32xbf16, #tpu.memory_space<vmem>>, %arg8: memref<1x32xf32, #tpu.memory_space<vmem>>, %arg9: memref<32x64xbf16, #tpu.memory_space<vmem>>, %arg10: memref<1x64xf32, #tpu.memory_space<vmem>>, %arg11: memref<64x32xbf16, #tpu.memory_space<vmem>>, %arg12: memref<1x32xf32, #tpu.memory_space<vmem>>, %arg13: memref<64x32xbf16, #tpu.memory_space<vmem>>, %arg14: memref<1x32xf32, #tpu.memory_space<vmem>>, %arg15: memref<64x32xbf16, #tpu.memory_space<vmem>>, %arg16: memref<1x32xf32, #tpu.memory_space<vmem>>, %arg17: memref<8x32xf32, #tpu.memory_space<vmem>>, %arg18: memref<8x32xf32, #tpu.memory_space<vmem>>, %arg19: memref<8x32xf32, #tpu.memory_space<vmem>>, %arg20: memref<8x64xf32, #tpu.memory_space<vmem>>) attributes {dimension_semantics = [#tpu.dimension_semantics<parallel>, #tpu.dimension_semantics<arbitrary>], iteration_bounds = array<i64: 1, 1>, scalar_prefetch = 0 : i64, scratch_operands = 1 : i64, tpu.core_type = #tpu.core_type<tc>, window_params = [{transform_indices = @transform_0, window_bounds = array<i64: 8, 16>}, {pipeline_mode = #tpu.pipeline_mode<synchronous>, transform_indices = @transform_1, window_bounds = array<i64: 16, 32>}, {pipeline_mode = #tpu.pipeline_mode<synchronous>, transform_indices = @transform_2, window_bounds = array<i64: 1, 32>}, {pipeline_mode = #tpu.pipeline_mode<synchronous>, transform_indices = @transform_3, window_bounds = array<i64: 32, 64>}, {pipeline_mode = #tpu.pipeline_mode<synchronous>, transform_indices = @transform_4, window_bounds = array<i64: 1, 64>}, {pipeline_mode = #tpu.pipeline_mode<synchronous>, transform_indices = @transform_5, window_bounds = array<i64: 16, 32>}, {pipeline_mode = #tpu.pipeline_mode<synchronous>, transform_indices = @transform_6, window_bounds = array<i64: 1, 32>}, {pipeline_mode = #tpu.pipeline_mode<synchronous>, transform_indices = @transform_7, window_bounds = array<i64: 32, 64>}, {pipeline_mode = #tpu.pipeline_mode<synchronous>, transform_indices = @transform_8, window_bounds = array<i64: 1, 64>}, {transform_indices = @transform_9, window_bounds = array<i64: 64, 32>}, {transform_indices = @transform_10, window_bounds = array<i64: 1, 32>}, {transform_indices = @transform_11, window_bounds = array<i64: 64, 32>}, {transform_indices = @transform_12, window_bounds = array<i64: 1, 32>}, {transform_indices = @transform_13, window_bounds = array<i64: 64, 32>}, {transform_indices = @transform_14, window_bounds = array<i64: 1, 32>}, {transform_indices = @transform_15, window_bounds = array<i64: 8, 32>}, {transform_indices = @transform_16, window_bounds = array<i64: 8, 32>}, {transform_indices = @transform_17, window_bounds = array<i64: 8, 32>}]} {
    %c0_i32 = arith.constant 0 : i32
    %0 = arith.cmpi eq, %arg1, %c0_i32 : i32
    %1 = arith.extui %0 : i1 to i32
    %c0_i32_0 = arith.constant 0 : i32
    %2 = arith.cmpi ne, %1, %c0_i32_0 : i32
    scf.if %2 {
      %c0_31 = arith.constant 0 : index
      %c0_32 = arith.constant 0 : index
      %47 = vector.load %arg2[%c0_31, %c0_32] : memref<8x16xf32, #tpu.memory_space<vmem>>, vector<8x16xf32>
      %48 = arith.truncf %47 : vector<8x16xf32> to vector<8x16xbf16>
      %c0_33 = arith.constant 0 : index
      %c0_34 = arith.constant 0 : index
      %49 = vector.load %arg3[%c0_33, %c0_34] : memref<16x32xbf16, #tpu.memory_space<vmem>>, vector<16x32xbf16>
      %cst_35 = arith.constant dense<0.000000e+00> : vector<8x32xf32>
      %50 = tpu.matmul %48, %49, %cst_35 {dimension_numbers = #tpu.dot_dimension_numbers<[1], [0], [0], [1], [0, 0, 1, 1], [], []>} : vector<8x16xbf16>, vector<16x32xbf16>, vector<8x32xf32> -> vector<8x32xf32>
      %c0_36 = arith.constant 0 : index
      %c0_37 = arith.constant 0 : index
      %51 = vector.load %arg4[%c0_36, %c0_37] : memref<1x32xf32, #tpu.memory_space<vmem>>, vector<1x32xf32>
      %52 = vector.broadcast %51 : vector<1x32xf32> to vector<8x32xf32>
      %53 = arith.addf %50, %52 : vector<8x32xf32>
      %cst_38 = arith.constant 0.000000e+00 : f32
      %54 = vector.broadcast %cst_38 : f32 to vector<8x32xf32>
      %55 = arith.maximumf %53, %54 : vector<8x32xf32>
      %56 = arith.truncf %47 : vector<8x16xf32> to vector<8x16xbf16>
      %c0_39 = arith.constant 0 : index
      %c0_40 = arith.constant 0 : index
      %57 = vector.load %arg7[%c0_39, %c0_40] : memref<16x32xbf16, #tpu.memory_space<vmem>>, vector<16x32xbf16>
      %cst_41 = arith.constant dense<0.000000e+00> : vector<8x32xf32>
      %58 = tpu.matmul %56, %57, %cst_41 {dimension_numbers = #tpu.dot_dimension_numbers<[1], [0], [0], [1], [0, 0, 1, 1], [], []>} : vector<8x16xbf16>, vector<16x32xbf16>, vector<8x32xf32> -> vector<8x32xf32>
      %c0_42 = arith.constant 0 : index
      %c0_43 = arith.constant 0 : index
      %59 = vector.load %arg8[%c0_42, %c0_43] : memref<1x32xf32, #tpu.memory_space<vmem>>, vector<1x32xf32>
      %60 = vector.broadcast %59 : vector<1x32xf32> to vector<8x32xf32>
      %61 = arith.addf %58, %60 : vector<8x32xf32>
      %cst_44 = arith.constant 0.000000e+00 : f32
      %62 = vector.broadcast %cst_44 : f32 to vector<8x32xf32>
      %63 = arith.maximumf %61, %62 : vector<8x32xf32>
      %64 = arith.truncf %55 : vector<8x32xf32> to vector<8x32xbf16>
      %c0_45 = arith.constant 0 : index
      %c0_46 = arith.constant 0 : index
      %65 = vector.load %arg5[%c0_45, %c0_46] : memref<32x64xbf16, #tpu.memory_space<vmem>>, vector<32x64xbf16>
      %cst_47 = arith.constant dense<0.000000e+00> : vector<8x64xf32>
      %66 = tpu.matmul %64, %65, %cst_47 {dimension_numbers = #tpu.dot_dimension_numbers<[1], [0], [0], [1], [0, 0, 1, 1], [], []>} : vector<8x32xbf16>, vector<32x64xbf16>, vector<8x64xf32> -> vector<8x64xf32>
      %c0_48 = arith.constant 0 : index
      %c0_49 = arith.constant 0 : index
      %67 = vector.load %arg6[%c0_48, %c0_49] : memref<1x64xf32, #tpu.memory_space<vmem>>, vector<1x64xf32>
      %68 = vector.broadcast %67 : vector<1x64xf32> to vector<8x64xf32>
      %69 = arith.addf %66, %68 : vector<8x64xf32>
      %cst_50 = arith.constant 0.000000e+00 : f32
      %70 = vector.broadcast %cst_50 : f32 to vector<8x64xf32>
      %71 = arith.maximumf %69, %70 : vector<8x64xf32>
      %72 = arith.truncf %63 : vector<8x32xf32> to vector<8x32xbf16>
      %c0_51 = arith.constant 0 : index
      %c0_52 = arith.constant 0 : index
      %73 = vector.load %arg9[%c0_51, %c0_52] : memref<32x64xbf16, #tpu.memory_space<vmem>>, vector<32x64xbf16>
      %cst_53 = arith.constant dense<0.000000e+00> : vector<8x64xf32>
      %74 = tpu.matmul %72, %73, %cst_53 {dimension_numbers = #tpu.dot_dimension_numbers<[1], [0], [0], [1], [0, 0, 1, 1], [], []>} : vector<8x32xbf16>, vector<32x64xbf16>, vector<8x64xf32> -> vector<8x64xf32>
      %c0_54 = arith.constant 0 : index
      %c0_55 = arith.constant 0 : index
      %75 = vector.load %arg10[%c0_54, %c0_55] : memref<1x64xf32, #tpu.memory_space<vmem>>, vector<1x64xf32>
      %76 = vector.broadcast %75 : vector<1x64xf32> to vector<8x64xf32>
      %77 = arith.addf %74, %76 : vector<8x64xf32>
      %cst_56 = arith.constant 0.000000e+00 : f32
      %78 = vector.broadcast %cst_56 : f32 to vector<8x64xf32>
      %79 = arith.maximumf %77, %78 : vector<8x64xf32>
      %80 = arith.addf %71, %79 : vector<8x64xf32>
      %cst_57 = arith.constant 5.000000e-01 : f32
      %81 = vector.broadcast %cst_57 : f32 to vector<8x64xf32>
      %82 = arith.mulf %81, %80 : vector<8x64xf32>
      %c0_58 = arith.constant 0 : index
      %c0_59 = arith.constant 0 : index
      %83 = vector.load %arg20[%c0_58, %c0_59] : memref<8x64xf32, #tpu.memory_space<vmem>>, vector<8x64xf32>
      tpu.vector_store %arg20[%c0_58, %c0_59], %82 {strides = array<i32>} : memref<8x64xf32, #tpu.memory_space<vmem>>, vector<8x64xf32>,
    } else {
    }
    %c0 = arith.constant 0 : index
    %c0_1 = arith.constant 0 : index
    %3 = vector.load %arg20[%c0, %c0_1] : memref<8x64xf32, #tpu.memory_space<vmem>>, vector<8x64xf32>
    %4 = arith.truncf %3 : vector<8x64xf32> to vector<8x64xbf16>
    %c0_2 = arith.constant 0 : index
    %c0_3 = arith.constant 0 : index
    %5 = vector.load %arg11[%c0_2, %c0_3] : memref<64x32xbf16, #tpu.memory_space<vmem>>, vector<64x32xbf16>
    %cst = arith.constant dense<0.000000e+00> : vector<8x32xf32>
    %6 = tpu.matmul %4, %5, %cst {dimension_numbers = #tpu.dot_dimension_numbers<[1], [0], [0], [1], [0, 0, 1, 1], [], []>} : vector<8x64xbf16>, vector<64x32xbf16>, vector<8x32xf32> -> vector<8x32xf32>
    %c0_4 = arith.constant 0 : index
    %c0_5 = arith.constant 0 : index
    %7 = vector.load %arg12[%c0_4, %c0_5] : memref<1x32xf32, #tpu.memory_space<vmem>>, vector<1x32xf32>
    %8 = vector.broadcast %7 : vector<1x32xf32> to vector<8x32xf32>
    %9 = arith.addf %6, %8 : vector<8x32xf32>
    %c0_6 = arith.constant 0 : index
    %c0_7 = arith.constant 0 : index
    %10 = vector.load %arg13[%c0_6, %c0_7] : memref<64x32xbf16, #tpu.memory_space<vmem>>, vector<64x32xbf16>
    %cst_8 = arith.constant dense<0.000000e+00> : vector<8x32xf32>
    %11 = tpu.matmul %4, %10, %cst_8 {dimension_numbers = #tpu.dot_dimension_numbers<[1], [0], [0], [1], [0, 0, 1, 1], [], []>} : vector<8x64xbf16>, vector<64x32xbf16>, vector<8x32xf32> -> vector<8x32xf32>
    %c0_9 = arith.constant 0 : index
    %c0_10 = arith.constant 0 : index
    %12 = vector.load %arg14[%c0_9, %c0_10] : memref<1x32xf32, #tpu.memory_space<vmem>>, vector<1x32xf32>
    %13 = vector.broadcast %12 : vector<1x32xf32> to vector<8x32xf32>
    %14 = arith.addf %11, %13 : vector<8x32xf32>
    %c0_11 = arith.constant 0 : index
    %c0_12 = arith.constant 0 : index
    %15 = vector.load %arg15[%c0_11, %c0_12] : memref<64x32xbf16, #tpu.memory_space<vmem>>, vector<64x32xbf16>
    %cst_13 = arith.constant dense<0.000000e+00> : vector<8x32xf32>
    %16 = tpu.matmul %4, %15, %cst_13 {dimension_numbers = #tpu.dot_dimension_numbers<[1], [0], [0], [1], [0, 0, 1, 1], [], []>} : vector<8x64xbf16>, vector<64x32xbf16>, vector<8x32xf32> -> vector<8x32xf32>
    %c0_14 = arith.constant 0 : index
    %c0_15 = arith.constant 0 : index
    %17 = vector.load %arg16[%c0_14, %c0_15] : memref<1x32xf32, #tpu.memory_space<vmem>>, vector<1x32xf32>
    %18 = vector.broadcast %17 : vector<1x32xf32> to vector<8x32xf32>
    %19 = arith.addf %16, %18 : vector<8x32xf32>
    %20 = math.exp %9 : vector<8x32xf32>
    %cst_16 = arith.constant 9.99999974E-6 : f32
    %cst_17 = arith.constant 1.000000e+06 : f32
    %21 = vector.broadcast %cst_16 : f32 to vector<8x32xf32>
    %22 = arith.maximumf %21, %20 : vector<8x32xf32>
    %23 = vector.broadcast %cst_17 : f32 to vector<8x32xf32>
    %24 = arith.minimumf %23, %22 : vector<8x32xf32>
    %c0_18 = arith.constant 0 : index
    %c0_19 = arith.constant 0 : index
    %25 = vector.load %arg17[%c0_18, %c0_19] : memref<8x32xf32, #tpu.memory_space<vmem>>, vector<8x32xf32>
    tpu.vector_store %arg17[%c0_18, %c0_19], %24 {strides = array<i32>} : memref<8x32xf32, #tpu.memory_space<vmem>>, vector<8x32xf32>,
    %cst_20 = arith.constant 2.000000e+01 : f32
    %26 = vector.broadcast %cst_20 : f32 to vector<8x32xf32>
    %27 = arith.cmpf ogt, %14, %26 : vector<8x32xf32>
    %cst_21 = arith.constant 2.000000e+01 : f32
    %28 = vector.broadcast %cst_21 : f32 to vector<8x32xf32>
    %29 = arith.minimumf %14, %28 : vector<8x32xf32>
    %30 = math.exp %29 : vector<8x32xf32>
    %cst_22 = arith.constant 1.000000e+00 : f32
    %31 = vector.broadcast %cst_22 : f32 to vector<8x32xf32>
    %32 = arith.addf %31, %30 : vector<8x32xf32>
    %33 = math.log %32 : vector<8x32xf32>
    %34 = arith.select %27, %14, %33 : vector<8x32xi1>, vector<8x32xf32>
    %cst_23 = arith.constant 9.99999974E-5 : f32
    %cst_24 = arith.constant 1.000000e+04 : f32
    %35 = vector.broadcast %cst_23 : f32 to vector<8x32xf32>
    %36 = arith.maximumf %35, %34 : vector<8x32xf32>
    %37 = vector.broadcast %cst_24 : f32 to vector<8x32xf32>
    %38 = arith.minimumf %37, %36 : vector<8x32xf32>
    %c0_25 = arith.constant 0 : index
    %c0_26 = arith.constant 0 : index
    %39 = vector.load %arg18[%c0_25, %c0_26] : memref<8x32xf32, #tpu.memory_space<vmem>>, vector<8x32xf32>
    tpu.vector_store %arg18[%c0_25, %c0_26], %38 {strides = array<i32>} : memref<8x32xf32, #tpu.memory_space<vmem>>, vector<8x32xf32>,
    %cst_27 = arith.constant 0.000000e+00 : f32
    %40 = vector.broadcast %cst_27 : f32 to vector<8x32xf32>
    %41 = arith.subf %40, %19 : vector<8x32xf32>
    %42 = math.exp %41 : vector<8x32xf32>
    %cst_28 = arith.constant 1.000000e+00 : f32
    %43 = vector.broadcast %cst_28 : f32 to vector<8x32xf32>
    %44 = arith.addf %43, %42 : vector<8x32xf32>
    %45 = tpu.reciprocal %44 {approx = true} : vector<8x32xf32> -> vector<8x32xf32>
    %c0_29 = arith.constant 0 : index
    %c0_30 = arith.constant 0 : index
    %46 = vector.load %arg19[%c0_29, %c0_30] : memref<8x32xf32, #tpu.memory_space<vmem>>, vector<8x32xf32>
    tpu.vector_store %arg19[%c0_29, %c0_30], %45 {strides = array<i32>} : memref<8x32xf32, #tpu.memory_space<vmem>>, vector<8x32xf32>,
    return
  }
  func.func @transform_0(%arg0: i32, %arg1: i32) -> (i32, i32) {
    %c0_i32 = arith.constant 0 : i32
    %c0_i32_0 = arith.constant 0 : i32
    return %arg0, %c0_i32 : i32, i32
  }
  func.func @transform_1(%arg0: i32, %arg1: i32) -> (i32, i32) {
    %c0_i32 = arith.constant 0 : i32
    %c0_i32_0 = arith.constant 0 : i32
    %c0_i32_1 = arith.constant 0 : i32
    return %c0_i32, %c0_i32_0 : i32, i32
  }
  func.func @transform_2(%arg0: i32, %arg1: i32) -> (i32, i32) {
    %c0_i32 = arith.constant 0 : i32
    %c0_i32_0 = arith.constant 0 : i32
    %c0_i32_1 = arith.constant 0 : i32
    return %c0_i32, %c0_i32_0 : i32, i32
  }
  func.func @transform_3(%arg0: i32, %arg1: i32) -> (i32, i32) {
    %c0_i32 = arith.constant 0 : i32
    %c0_i32_0 = arith.constant 0 : i32
    %c0_i32_1 = arith.constant 0 : i32
    return %c0_i32, %c0_i32_0 : i32, i32
  }
  func.func @transform_4(%arg0: i32, %arg1: i32) -> (i32, i32) {
    %c0_i32 = arith.constant 0 : i32
    %c0_i32_0 = arith.constant 0 : i32
    %c0_i32_1 = arith.constant 0 : i32
    return %c0_i32, %c0_i32_0 : i32, i32
  }
  func.func @transform_5(%arg0: i32, %arg1: i32) -> (i32, i32) {
    %c0_i32 = arith.constant 0 : i32
    %c0_i32_0 = arith.constant 0 : i32
    %c0_i32_1 = arith.constant 0 : i32
    return %c0_i32, %c0_i32_0 : i32, i32
  }
  func.func @transform_6(%arg0: i32, %arg1: i32) -> (i32, i32) {
    %c0_i32 = arith.constant 0 : i32
    %c0_i32_0 = arith.constant 0 : i32
    %c0_i32_1 = arith.constant 0 : i32
    return %c0_i32, %c0_i32_0 : i32, i32
  }
  func.func @transform_7(%arg0: i32, %arg1: i32) -> (i32, i32) {
    %c0_i32 = arith.constant 0 : i32
    %c0_i32_0 = arith.constant 0 : i32
    %c0_i32_1 = arith.constant 0 : i32
    return %c0_i32, %c0_i32_0 : i32, i32
  }
  func.func @transform_8(%arg0: i32, %arg1: i32) -> (i32, i32) {
    %c0_i32 = arith.constant 0 : i32
    %c0_i32_0 = arith.constant 0 : i32
    %c0_i32_1 = arith.constant 0 : i32
    return %c0_i32, %c0_i32_0 : i32, i32
  }
  func.func @transform_9(%arg0: i32, %arg1: i32) -> (i32, i32) {
    %c0_i32 = arith.constant 0 : i32
    %c0_i32_0 = arith.constant 0 : i32
    return %c0_i32, %arg1 : i32, i32
  }
  func.func @transform_10(%arg0: i32, %arg1: i32) -> (i32, i32) {
    %c0_i32 = arith.constant 0 : i32
    %c0_i32_0 = arith.constant 0 : i32
    return %c0_i32, %arg1 : i32, i32
  }
  func.func @transform_11(%arg0: i32, %arg1: i32) -> (i32, i32) {
    %c0_i32 = arith.constant 0 : i32
    %c0_i32_0 = arith.constant 0 : i32
    return %c0_i32, %arg1 : i32, i32
  }
  func.func @transform_12(%arg0: i32, %arg1: i32) -> (i32, i32) {
    %c0_i32 = arith.constant 0 : i32
    %c0_i32_0 = arith.constant 0 : i32
    return %c0_i32, %arg1 : i32, i32
  }
  func.func @transform_13(%arg0: i32, %arg1: i32) -> (i32, i32) {
    %c0_i32 = arith.constant 0 : i32
    %c0_i32_0 = arith.constant 0 : i32
    return %c0_i32, %arg1 : i32, i32
  }
  func.func @transform_14(%arg0: i32, %arg1: i32) -> (i32, i32) {
    %c0_i32 = arith.constant 0 : i32
    %c0_i32_0 = arith.constant 0 : i32
    return %c0_i32, %arg1 : i32, i32
  }
  func.func @transform_15(%arg0: i32, %arg1: i32) -> (i32, i32) {
    %c0_i32 = arith.constant 0 : i32
    return %arg0, %arg1 : i32, i32
  }
  func.func @transform_16(%arg0: i32, %arg1: i32) -> (i32, i32) {
    %c0_i32 = arith.constant 0 : i32
    return %arg0, %arg1 : i32, i32
  }
  func.func @transform_17(%arg0: i32, %arg1: i32) -> (i32, i32) {
    %c0_i32 = arith.constant 0 : i32
    return %arg0, %arg1 : i32, i32
  }
}

</mosaic_0001>

<bundles_post_ra>
// kernel: forward.2
= control target key start
LH: loop header
LB: loop body
LE: loop exit
PB: predicated region body
PF: predicated region fallthrough
CT: control target
= control target key end

     0   :  { %v551_v1 = vmov 0.0   ;;  %vm552_vm0 = vmmov 0   ;;  %vm64_vm1 = vcmask 261120   ;;  %s697_s0 = inlined_call_operand.vmem [shape: f32[8,32], index: 0, kind: input, shape index: {}]   ;;  %s698_s1 = inlined_call_operand.vmem [shape: f32[8,32], index: 1, kind: input, shape index: {}]   ;;  %s699_s2 = inlined_call_operand.vmem [shape: bf16[32,64], index: 2, kind: input, shape index: {}]   ;;  %s700_s3 = inlined_call_operand.vmem [shape: f32[1,64], index: 3, kind: input, shape index: {}]   ;;  %s701_s4 = inlined_call_operand.vmem [shape: bf16[64,32], index: 4, kind: input, shape index: {}]   ;;  %s702_s5 = inlined_call_operand.vmem [shape: f32[1,32], index: 5, kind: input, shape index: {}]   ;;  %s703_s6 = inlined_call_operand.vmem [shape: bf16[32,16], index: 6, kind: input, shape index: {}]   ;;  %s704_s7 = inlined_call_operand.vmem [shape: f32[1,16], index: 7, kind: input, shape index: {}]   ;;  %s705_s8 = inlined_call_operand.vmem [shape: f32[16,4], index: 8, kind: input, shape index: {}]   ;;  %s706_s9 = inlined_call_operand.vmem [shape: f32[8,16], index: 9, kind: output, shape index: {0}]   ;;  %s707_s10 = inlined_call_operand.hbm [shape: f32[8,16], index: 10, kind: output, shape index: {1}]   ;;  %s708_s11 = inlined_call_operand.vmem [shape: f32[8,4], index: 11, kind: output, shape index: {2}]  }
   0x1   :  { %v517_v0 = vld [vmem:[%s699_s2 + $0x8] sm:$0xff]   ;;  %471 = vmatprep.subr.bf16.mxu0 %v551_v1  ;;  %479 = vmatprep.subr.bf16.mxu1 %v551_v1  ;;  %v518_v2 = vld [vmem:[%s699_s2] sm:$0xff]   ;;  %v519_v6 = vld [vmem:[%s701_s4 + $0x18] sm:$0xff]  }
   0x2   :  { %472 = vmatpush3.bf16.msra.mxu0 %v517_v0  ;;  %480 = vmatpush3.bf16.msra.mxu1 %v517_v0  ;;  %v37_v3 = vld [vmem:[%s697_s0] sm:$0xff] }
   0x3   :  { %v43_v4 = vld [vmem:[%s698_s1] sm:$0xff]  ;;  %473 = vmatprep.subr.bf16.mxu0 %v551_v1  ;;  %481 = vmatprep.subr.bf16.mxu1 %v551_v1  ;;  %v109_v8 = vpack.c.bf16 %v37_v3, %v37_v3 }
   0x4   :  { %v44_v5 = vadd.f32 %v43_v4, %v37_v3  ;;  %475 = vmatprep.mubr.msk.bf16.mxu0 %vm552_vm0, %v551_v1  ;;  %483 = vmatprep.mubr.msk.bf16.mxu1 %vm552_vm0, %v551_v1 }
   0x6   :  { %v45_v7 = vpack.c.bf16 %v44_v5, %v44_v5  ;;  %474 = vmatpush3.bf16.msra.mxu0 %v518_v2  ;;  %482 = vmatpush3.bf16.msra.mxu1 %v518_v2 }
   0x7   :  { %487 = vmatprep.subr.bf16.mxu0 %v551_v1  ;;  %499 = vmatprep.subr.bf16.mxu1 %v551_v1 }
   0x8   :  { %17 = vsyncpa [#allocation3], 0  ;;  %v520_v9 = vld [vmem:[%s701_s4 + $0x10] sm:$0xff]   ;;  %v521_v10 = vld [vmem:[%s701_s4 + $0x8] sm:$0xff]   ;;  %vm194_vm2 = vcmask 523264   ;;  %vm309_vm3 = vcmask 130048  }
   0x9   :  { %476 = vmatmul.mubr.msk.bf16.vlgmr.msra.gmra.mxu0 %vm64_vm1, %v45_v7  ;;  %484 = vmatmul.mubr.msk.bf16.vlgmr.msra.gmra.mxu1 %vm64_vm1, %v109_v8  ;;  %v522_v11 = vld [vmem:[%s701_s4] sm:$0xff]   ;;  %v523_v26 = vld [vmem:[%s703_s6 + $0x8] sm:$0xff]   ;;  %vm320_vm4 = vcmask 31744  }
   0xa   :  { %488 = vmatpush3.bf16.msra.mxu0 %v519_v6  ;;  %495 = vmatprep.mubr.msk.bf16.mxu0 %vm552_vm0, %v551_v1  ;;  %v438_v12 = vld [vmem:[%s700_s3] ss:$0 sm:$0xff]  ;;  %v313_v38 = vld [vmem:[%s705_s8 + $0x8] sm:$0xff] }
   0xb   :  { %489 = vmatprep.subr.bf16.mxu0 %v551_v1  ;;  %503 = vmatprep.mubr.msk.bf16.mxu1 %vm552_vm0, %v551_v1  ;;  %v524_v27 = vld [vmem:[%s703_s6] sm:$0xff]   ;;  %v319_v49 = vmul.f32 %v313_v38, %v313_v38 }
   0xc   :  { %500 = vmatpush3.bf16.msra.mxu1 %v523_v26  ;;  %v443_v28 = vld [vmem:[%s702_s5] ss:$0 sm:$0xff] }
   0xd   :  { %501 = vmatprep.subr.bf16.mxu1 %v551_v1  ;;  %v312_v39 = vld [vmem:[%s705_s8] sm:$0xff]  ;;  %v322_v52 = vsel %vm320_vm4, %v319_v49, 0.0 }
   0xe   :  { %490 = vmatpush3.bf16.msra.mxu0 %v520_v9  ;;  %v449_v40 = vld [vmem:[%s704_s7] ss:$0 sm:$0xff]  ;;  %v318_v50 = vmul.f32 %v312_v39, %v312_v39  ;;  %s553_s7 = smov [#allocation2]  }
   0xf   :  { %491 = vmatprep.subr.bf16.mxu0 %v551_v1  ;;  %s424_s8 = sshll.u32 %s553_s7, 4  ;;  %s425_s8 = int_to_ptr.vmem [resolvable:$true] %s424_s8 }
  0x10   :  { %502 = vmatpush3.bf16.msra.mxu1 %v524_v27  ;;  %v321_v51 = vsel %vm320_vm4, %v318_v50, 0.0  ;;  %p534_p1 = scmp.lt.s32.totalorder %s425_s8, %s425_s8 }
  0x11   :  { %507 = vmatprep.subr.mxu1 %v551_v1  ;;  %v323_v53 = vadd.f32 %v322_v52, %v321_v51 }
  0x12   :  { %492 = vmatpush3.bf16.msra.mxu0 %v521_v10 }
  0x13   :  { %493 = vmatprep.subr.bf16.mxu0 %v551_v1  ;;  %v324_v54 = vrot.slane %v323_v53, 4 }
  0x15   :  { %v325_v55 = vadd.f32 %v324_v54, %v323_v53 }
  0x16   :  { %494 = vmatpush3.bf16.msra.mxu0 %v522_v11 }
  0x17   :  { %v326_v56 = vrot.slane %v325_v55, 2 }
  0x19   :  { %v327_v57 = vadd.f32 %v326_v56, %v325_v55 }
  0x1b   :  { %v328_v58 = vrot.slane %v327_v57, 1 }
  0x1d   :  { %v329_v59 = vadd.f32 %v328_v58, %v327_v57 }
  0xc9   :  { %v102_v13 = vpop.f32.mrf.mxu0  ;;  %v147_v14 = vpop.f32.mrf.mxu1 }
  0xca   :  { %v103_v15 = vadd.f32 %v438_v12, %v102_v13  ;;  %v148_v16 = vadd.f32 %v438_v12, %v147_v14 }
  0xcb   :  { %v477_v17 = vpop.f32.mrf.mxu0  ;;  %v485_v18 = vpop.f32.mrf.mxu1 }
  0xcc   :  { %v108_v19 = vmax.f32 %v103_v15, 0.0  ;;  %v153_v20 = vmax.f32 %v148_v16, 0.0 }
  0xcd   :  { %v105_v21 = vpop.f32.mrf.mxu0  ;;  %v150_v22 = vpop.f32.mrf.mxu1 }
  0xce   :  { %v154_v23 = vpack.c.bf16 %v153_v20, %v108_v19 }
  0xcf   :  { %v478_v24 = vpop.f32.mrf.mxu0  ;;  %v486_v25 = vpop.f32.mrf.mxu1 }
  0xd0   :  { %496 = vmatmul.mubr.msk.bf16.vlgmr.msra.gmra.mxu0 %vm194_vm2, %v154_v23 }
 0x190   :  { %v232_v29 = vpop.f32.mrf.mxu0 }
 0x191   :  { %v233_v31 = vadd.f32 %v443_v28, %v232_v29 }
 0x192   :  { %v497_v30 = vpop.f32.mrf.mxu0 }
 0x193   :  { %v239_v35 = vmax.f32 %v233_v31, 0.0 }
 0x194   :  { %v235_v32 = vpop.f32.mrf.mxu0 }
 0x195   :  { %v236_v33 = vadd.f32 %v443_v28, %v235_v32 }
 0x196   :  { %v498_v34 = vpop.f32.mrf.mxu0 }
 0x197   :  { %v240_v36 = vmax.f32 %v236_v33, 0.0 }
 0x199   :  { %v241_v37 = vpack.c.bf16 %v240_v36, %v239_v35 }
 0x19b   :  { %504 = vmatmul.mubr.msk.bf16.vlgmr.msra.gmra.mxu1 %vm64_vm1, %v241_v37 }
 0x19c   :  { %508 = vmatpush3.msra.mxu1 %v313_v38  ;;  %511 = vmatprep.mubr.msk.f32.mxu1 %vm552_vm0, %v551_v1 }
 0x19d   :  { %509 = vmatprep.subr.mxu1 %v551_v1 }
 0x19e   :  { %510 = vmatpush3.msra.mxu1 %v312_v39 }
 0x25b   :  { %v302_v41 = vpop.f32.mrf.mxu1 }
 0x25c   :  { %v303_v42 = vadd.f32 %v449_v40, %v302_v41 }
 0x25d   :  { %v505_v43 = vpop.f32.mrf.mxu1 }
 0x25e   :  { %310 = vst.msk [vmem:[%s706_s9] sm:$0xff] %vm309_vm3, %v303_v42  ;;  %s529_s9 = scalar_lea.vmem %s425_s8, 128 }
 0x25f   :  { %v305_v44 = vpop.f32.mrf.mxu1  ;;  %p530_p0 = scmp.ne.s32.totalorder %s425_s8, %s529_s9  ;;  %p535_p2 = scmp.lt.s32.totalorder %s529_s9, %s529_s9 }
 0x260   :  { %v306_v45 = vadd.f32 %v449_v40, %v305_v44 }
 0x261   :  { %v506_v46 = vpop.f32.mrf.mxu1  ;;  %p536_p3 = por %p535_p2, %p534_p1 }
 0x262   :  { %311 = vst.msk [vmem:[#allocation2] sm:$0xff] %vm309_vm3, %v306_v45  ;;  %512 = vmatmul.mubr.msk.f32.vlgmr.msra.gmra.mxu1 %vm309_vm3, %v306_v45  ;;  %v314_v47 = vmul.f32 %v306_v45, %v306_v45 }
 0x263   :  { %p537_p4 = pnand %p536_p3, %p530_p0 }
 0x264   :  { %v315_v48 = vsel %vm309_vm3, %v314_v47, 0.0 }
 0x265   :  { %316 = vadd.xlane.f32.xlu0 %v315_v48 }
 0x2ee   :  { %v317_v60 = vpop.xlane.xlu0 %316 }
 0x2ef   :  { %v403_v62 = vadd.f32 %v329_v59, %v317_v60 }
 0x322   :  { %v399_v61 = vpop.f32.mrf.mxu1 }
 0x323   :  { %v404_v63 = vmul.f32 2.0, %v399_v61 }
 0x324   :  { %v513_v0 = vpop.f32.mrf.mxu1 }
 0x325   :  { %v405_v1 = vsub.f32 %v403_v62, %v404_v63 }
 0x327   :  { %v406_v2 = vmax.f32 %v405_v1, 0.0 }
 0x329   :  { %v407_v3 = vadd.f32 1.0, %v406_v2 }
 0x32b   :  { %525 = vrcp.f32 %v407_v3 }
 0x338   :  { %v526_v4 = vpop.eup %525 }
 0x339   :  { %v410_v5 = vsel %vm320_vm4, %v526_v4, 0.0 }
 0x33a   :  { %411 = vadd.xlane.f32.xlu0 %v410_v5 }
 0x33b   :  { %540 = shalt.err (!%p537_p4)
}
 0x33c   :  { %427 = dma.vmem_to_hbm [thread:$0]  %s425_s8, 128, %s707_s10, [#allocation3]  }
 0x3c3   :  { %v412_v6 = vpop.xlane.xlu0 %411 }
 0x3c4   :  { %527 = vrcp.f32 %v412_v6 }
 0x3d1   :  { %v528_v7 = vpop.eup %527 }
 0x3d2   :  { %v414_v8 = vmul.f32 %v528_v7, %v526_v4 }
 0x3d4   :  { %415 = vst.msk [vmem:[%s708_s11] sm:$0xff] %vm320_vm4, %v414_v8 }
 0x3d5   :  { %549 = dma.done.wait [#allocation3], 128  }
 0x3d6   :  { %550 = vsyncadd [#allocation3], 4294967168 }
 0x3d7   :  { %437 = vsyncpa [#allocation3], 1 }

// kernel: forward.3
= control target key start
LH: loop header
LB: loop body
LE: loop exit
PB: predicated region body
PF: predicated region fallthrough
CT: control target
= control target key end

     0   :  { %s1067_s0 = inlined_call_operand.vmem [shape: f32[8,16], index: 0, kind: input, shape index: {}]   ;;  %s1068_s1 = inlined_call_operand.vmem [shape: bf16[16,32], index: 1, kind: input, shape index: {}]   ;;  %s1069_s2 = inlined_call_operand.vmem [shape: f32[1,32], index: 2, kind: input, shape index: {}]   ;;  %s1070_s3 = inlined_call_operand.vmem [shape: bf16[32,64], index: 3, kind: input, shape index: {}]   ;;  %s1071_s4 = inlined_call_operand.vmem [shape: f32[1,64], index: 4, kind: input, shape index: {}]   ;;  %s1072_s5 = inlined_call_operand.vmem [shape: bf16[16,32], index: 5, kind: input, shape index: {}]   ;;  %s1073_s6 = inlined_call_operand.vmem [shape: f32[1,32], index: 6, kind: input, shape index: {}]   ;;  %s1074_s7 = inlined_call_operand.vmem [shape: bf16[32,64], index: 7, kind: input, shape index: {}]   ;;  %s1075_s8 = inlined_call_operand.vmem [shape: f32[1,64], index: 8, kind: input, shape index: {}]   ;;  %s1076_s9 = inlined_call_operand.vmem [shape: bf16[64,32], index: 9, kind: input, shape index: {}]   ;;  %s1077_s10 = inlined_call_operand.vmem [shape: f32[1,32], index: 10, kind: input, shape index: {}]   ;;  %s1078_s11 = inlined_call_operand.vmem [shape: bf16[64,32], index: 11, kind: input, shape index: {}]   ;;  %s1079_s12 = inlined_call_operand.vmem [shape: f32[1,32], index: 12, kind: input, shape index: {}]   ;;  %s1080_s13 = inlined_call_operand.vmem [shape: bf16[64,32], index: 13, kind: input, shape index: {}]   ;;  %s1081_s14 = inlined_call_operand.vmem [shape: f32[1,32], index: 14, kind: input, shape index: {}]   ;;  %s1082_s15 = inlined_call_operand.hbm [shape: f32[8,32], index: 15, kind: output, shape index: {0}]   ;;  %s1083_s16 = inlined_call_operand.hbm [shape: f32[8,32], index: 16, kind: output, shape index: {1}]   ;;  %s1084_s17 = inlined_call_operand.hbm [shape: f32[8,32], index: 17, kind: output, shape index: {2}]  }
   0x1   :  { %1085 = sst [smem:[#allocation10_spill]] %s1067_s0 }
   0x2   :  { %1086 = sst [smem:[#allocation11_spill]] %s1068_s1 }
   0x3   :  { %23 = vsyncpa [#allocation4], 0  ;;  %s1087_s26 = sld [smem:[#allocation11_spill]]  ;;  %v844_v1 = vmov 0.0   ;;  %v753_v2 = vld [vmem:[%s1072_s5] sm:$0xff]   ;;  %vm845_vm0 = vmmov 0  }
   0x4   :  { %683 = vmatprep.subr.bf16.mxu0 %v844_v1  ;;  %689 = vmatprep.subr.bf16.mxu1 %v844_v1  ;;  %s1088_s30 = sld [smem:[#allocation10_spill]]  ;;  %vm77_vm1 = vcmask 130048   ;;  %v754_v5 = vld [vmem:[%s1070_s3 + $0x8] sm:$0xff]  }
   0x5   :  { %685 = vmatprep.mubr.msk.bf16.mxu0 %vm845_vm0, %v844_v1  ;;  %690 = vmatpush3.bf16.msra.mxu1 %v753_v2 }
   0x6   :  { %691 = vmatprep.mubr.msk.bf16.mxu1 %vm845_vm0, %v844_v1  ;;  %695 = vmatprep.subr.bf16.mxu1 %v844_v1 }
   0x9   :  { %v752_v0 = vld [vmem:[%s1087_s26] sm:$0xff]  }
   0xa   :  { %684 = vmatpush3.bf16.msra.mxu0 %v752_v0  ;;  %v60_v3 = vld [vmem:[%s1088_s30] sm:$0xff] }
   0xb   :  { %v61_v4 = vpack.c.bf16 %v60_v3, %v60_v3  ;;  %711 = vmatprep.subr.bf16.mxu0 %v844_v1 }
   0xd   :  { %686 = vmatmul.mubr.msk.bf16.vlgmr.msra.gmra.mxu0 %vm77_vm1, %v61_v4  ;;  %692 = vmatmul.mubr.msk.bf16.vlgmr.msra.gmra.mxu1 %vm77_vm1, %v61_v4 }
   0xe   :  { %719 = vmatprep.mubr.msk.bf16.mxu0 %vm845_vm0, %v844_v1  ;;  %696 = vmatpush3.bf16.msra.mxu1 %v754_v5 }
   0xf   :  { %699 = vmatprep.mubr.msk.bf16.mxu1 %vm845_vm0, %v844_v1  ;;  %697 = vmatprep.subr.bf16.mxu1 %v844_v1 }
  0x10   :  { %24 = vsyncpa [#allocation6], 0  ;;  %v755_v6 = vld [vmem:[%s1070_s3] sm:$0xff]   ;;  %vm202_vm2 = vcmask 261120   ;;  %v756_v17 = vld [vmem:[%s1074_s7 + $0x8] sm:$0xff]   ;;  %vm317_vm3 = vcmask 523264  }
  0x11   :  { %v626_v7 = vld [vmem:[%s1069_s2] ss:$0 sm:$0xff]  ;;  %v758_v25 = vld [vmem:[%s1076_s9 + $0x18] sm:$0xff]   ;;  %v760_v27 = vld [vmem:[%s1076_s9 + $0x10] sm:$0xff]  }
  0x12   :  { %698 = vmatpush3.bf16.msra.mxu1 %v755_v6  ;;  %v629_v9 = vld [vmem:[%s1073_s6] ss:$0 sm:$0xff]  ;;  %v759_v26 = vld [vmem:[%s1078_s11 + $0x18] sm:$0xff]   ;;  %712 = vmatpush3.bf16.msra.mxu0 %v758_v25  ;;  %v761_v28 = vld [vmem:[%s1078_s11 + $0x10] sm:$0xff]  }
  0x13   :  { %703 = vmatprep.subr.bf16.mxu1 %v844_v1  ;;  %v757_v23 = vld [vmem:[%s1074_s7] sm:$0xff]   ;;  %713 = vmatprep.subr.bf16.mxu0 %v844_v1  ;;  %v762_v29 = vld [vmem:[%s1076_s9 + $0x8] sm:$0xff]   ;;  %v766_v50 = vld [vmem:[%s1080_s13 + $0x18] sm:$0xff]  }
  0x14   :  { %v763_v30 = vld [vmem:[%s1078_s11 + $0x8] sm:$0xff]   ;;  %v764_v31 = vld [vmem:[%s1076_s9] sm:$0xff]   ;;  %v767_v52 = vld [vmem:[%s1080_s13 + $0x10] sm:$0xff]  }
  0x15   :  { %v765_v32 = vld [vmem:[%s1078_s11] sm:$0xff]   ;;  %v768_v53 = vld [vmem:[%s1080_s13 + $0x8] sm:$0xff]  }
  0x16   :  { %714 = vmatpush3.bf16.msra.mxu0 %v760_v27  ;;  %v632_v35 = vld [vmem:[%s1071_s4] ss:$0 sm:$0xff] }
  0x17   :  { %715 = vmatprep.subr.bf16.mxu0 %v844_v1  ;;  %v636_v38 = vld [vmem:[%s1075_s8] ss:$0 sm:$0xff] }
  0x18   :  { %v769_v54 = vld [vmem:[%s1080_s13] sm:$0xff]  }
  0x19   :  { %v640_v55 = vld [vmem:[%s1077_s10] ss:$0 sm:$0xff] }
  0x1a   :  { %716 = vmatpush3.bf16.msra.mxu0 %v762_v29  ;;  %v646_v56 = vld [vmem:[%s1079_s12] ss:$0 sm:$0xff]  ;;  %s846_s12 = smov [#allocation3]  }
  0x1b   :  { %717 = vmatprep.subr.bf16.mxu0 %v844_v1  ;;  %v652_v6 = vld [vmem:[%s1081_s14] ss:$0 sm:$0xff]  ;;  %s591_s18 = sshll.u32 %s846_s12, 4  ;;  %s592_s18 = int_to_ptr.vmem [resolvable:$true] %s591_s18 }
  0x1c   :  { %s780_s14 = scalar_lea.vmem %s592_s18, 128  ;;  %p785_p1 = scmp.lt.s32.totalorder %s592_s18, %s592_s18 }
  0x1d   :  { %p781_p0 = scmp.ne.s32.totalorder %s592_s18, %s780_s14  ;;  %p786_p2 = scmp.lt.s32.totalorder %s780_s14, %s780_s14 }
  0x1e   :  { %718 = vmatpush3.bf16.msra.mxu0 %v764_v31 }
  0x1f   :  { %735 = vmatprep.subr.bf16.mxu0 %v844_v1  ;;  %p787_p3 = por %p786_p2, %p785_p1 }
  0x21   :  { %p788_p4 = pnand %p787_p3, %p781_p0 }
  0xcd   :  { %v115_v8 = vpop.f32.mrf.mxu0  ;;  %v171_v11 = vpop.f32.mrf.mxu1 }
  0xce   :  { %v116_v10 = vadd.f32 %v626_v7, %v115_v8  ;;  %v172_v14 = vadd.f32 %v629_v9, %v171_v11 }
  0xcf   :  { %v687_v12 = vpop.f32.mrf.mxu0  ;;  %v693_v15 = vpop.f32.mrf.mxu1 }
  0xd0   :  { %v121_v13 = vmax.f32 %v116_v10, 0.0  ;;  %v177_v21 = vmax.f32 %v172_v14, 0.0 }
  0xd1   :  { %v118_v16 = vpop.f32.mrf.mxu0  ;;  %v174_v19 = vpop.f32.mrf.mxu1 }
  0xd2   :  { %v178_v18 = vpack.c.bf16 %v121_v13, %v121_v13  ;;  %v247_v24 = vpack.c.bf16 %v177_v21, %v177_v21 }
  0xd3   :  { %v688_v20 = vpop.f32.mrf.mxu0  ;;  %v694_v22 = vpop.f32.mrf.mxu1 }
  0xd4   :  { %700 = vmatmul.mubr.msk.bf16.vlgmr.msra.gmra.mxu1 %vm202_vm2, %v178_v18 }
  0xd5   :  { %704 = vmatpush3.bf16.msra.mxu1 %v756_v17  ;;  %707 = vmatprep.mubr.msk.bf16.mxu1 %vm845_vm0, %v844_v1 }
  0xd6   :  { %705 = vmatprep.subr.bf16.mxu1 %v844_v1 }
  0xd9   :  { %706 = vmatpush3.bf16.msra.mxu1 %v757_v23 }
  0xda   :  { %723 = vmatprep.subr.bf16.mxu1 %v844_v1 }
  0xdc   :  { %708 = vmatmul.mubr.msk.bf16.vlgmr.msra.gmra.mxu1 %vm202_vm2, %v247_v24 }
  0xdd   :  { %731 = vmatprep.mubr.msk.bf16.mxu1 %vm845_vm0, %v844_v1  ;;  %724 = vmatpush3.bf16.msra.mxu1 %v759_v26 }
  0xde   :  { %725 = vmatprep.subr.bf16.mxu1 %v844_v1 }
  0xe1   :  { %726 = vmatpush3.bf16.msra.mxu1 %v761_v28 }
  0xe2   :  { %727 = vmatprep.subr.bf16.mxu1 %v844_v1 }
  0xe5   :  { %728 = vmatpush3.bf16.msra.mxu1 %v763_v30 }
  0xe6   :  { %729 = vmatprep.subr.bf16.mxu1 %v844_v1 }
  0xe9   :  { %730 = vmatpush3.bf16.msra.mxu1 %v765_v32 }
 0x194   :  { %v240_v33 = vpop.f32.mrf.mxu1 }
 0x195   :  { %v241_v39 = vadd.f32 %v632_v35, %v240_v33 }
 0x196   :  { %v701_v34 = vpop.f32.mrf.mxu1 }
 0x197   :  { %v246_v43 = vmax.f32 %v241_v39, 0.0 }
 0x198   :  { %v243_v36 = vpop.f32.mrf.mxu1 }
 0x19a   :  { %v702_v37 = vpop.f32.mrf.mxu1 }
 0x19c   :  { %v308_v40 = vpop.f32.mrf.mxu1 }
 0x19d   :  { %v309_v41 = vadd.f32 %v636_v38, %v308_v40 }
 0x19e   :  { %v709_v42 = vpop.f32.mrf.mxu1 }
 0x19f   :  { %v314_v44 = vmax.f32 %v309_v41, 0.0 }
 0x1a0   :  { %v311_v45 = vpop.f32.mrf.mxu1 }
 0x1a1   :  { %v315_v46 = vadd.f32 %v314_v44, %v246_v43 }
 0x1a2   :  { %v710_v47 = vpop.f32.mrf.mxu1 }
 0x1a3   :  { %v316_v48 = vmul.f32 0.5, %v315_v46 }
 0x1a5   :  { %318 = vst.msk [vmem:[#allocation2] sm:$0xff] %vm317_vm3, %v316_v48 }
 0x1ac   :  { %v319_v49 = vld [vmem:[#allocation2] sm:$0xff] }
 0x1ad   :  { %v320_v51 = vpack.c.bf16 %v319_v49, %v319_v49 }
 0x1af   :  { %720 = vmatmul.mubr.msk.bf16.vlgmr.msra.gmra.mxu0 %vm317_vm3, %v320_v51  ;;  %732 = vmatmul.mubr.msk.bf16.vlgmr.msra.gmra.mxu1 %vm317_vm3, %v320_v51 }
 0x1b0   :  { %736 = vmatpush3.bf16.msra.mxu0 %v766_v50  ;;  %743 = vmatprep.mubr.msk.bf16.mxu0 %vm845_vm0, %v844_v1 }
 0x1b1   :  { %737 = vmatprep.subr.bf16.mxu0 %v844_v1 }
 0x1b4   :  { %738 = vmatpush3.bf16.msra.mxu0 %v767_v52 }
 0x1b5   :  { %739 = vmatprep.subr.bf16.mxu0 %v844_v1 }
 0x1b8   :  { %740 = vmatpush3.bf16.msra.mxu0 %v768_v53 }
 0x1b9   :  { %741 = vmatprep.subr.bf16.mxu0 %v844_v1 }
 0x1bc   :  { %742 = vmatpush3.bf16.msra.mxu0 %v769_v54 }
 0x1bf   :  { %744 = vmatmul.mubr.msk.bf16.vlgmr.msra.gmra.mxu0 %vm317_vm3, %v320_v51 }
 0x26f   :  { %v398_v57 = vpop.f32.mrf.mxu0  ;;  %v477_v58 = vpop.f32.mrf.mxu1 }
 0x270   :  { %v399_v59 = vadd.f32 %v640_v55, %v398_v57  ;;  %v478_v60 = vadd.f32 %v646_v56, %v477_v58 }
 0x271   :  { %v721_v61 = vpop.f32.mrf.mxu0  ;;  %v733_v62 = vpop.f32.mrf.mxu1 }
 0x272   :  { %v562_v63 = vmul.f32 1.442695, %v399_v59  ;;  %v569_v0 = vmin.f32 %v478_v60, 20.0 }
 0x273   :  { %v401_v1 = vpop.f32.mrf.mxu0  ;;  %v480_v2 = vpop.f32.mrf.mxu1 }
 0x274   :  { %770 = vpow2.f32 %v562_v63  ;;  %v570_v3 = vmul.f32 1.442695, %v569_v0 }
 0x275   :  { %v722_v4 = vpop.f32.mrf.mxu0  ;;  %v734_v5 = vpop.f32.mrf.mxu1 }
 0x276   :  { %772 = vpow2.f32 %v570_v3 }
 0x27f   :  { %v556_v7 = vpop.f32.mrf.mxu0 }
 0x280   :  { %v557_v8 = vadd.f32 %v652_v6, %v556_v7 }
 0x281   :  { %v771_v9 = vpop.eup %770  ;;  %v745_v10 = vpop.f32.mrf.mxu0 }
 0x282   :  { %v579_v11 = vsub.f32 0.0, %v557_v8  ;;  %v564_v12 = vmax.f32 %v771_v9, 1e-05 }
 0x283   :  { %v773_v13 = vpop.eup %772  ;;  %v559_v14 = vpop.f32.mrf.mxu0 }
 0x284   :  { %v572_v15 = vadd.f32 1.0, %v773_v13  ;;  %v580_v16 = vmul.f32 1.442695, %v579_v11  ;;  %v565_v17 = vmin.f32 %v564_v12, 1000000.0 }
 0x285   :  { %v746_v18 = vpop.f32.mrf.mxu0 }
 0x286   :  { %774 = vlog2.f32 %v572_v15  ;;  %567 = vst.msk [vmem:[#allocation3] sm:$0xff] %vm202_vm2, %v565_v17 }
 0x287   :  { %776 = vpow2.f32 %v580_v16 }
 0x288   :  { %791 = shalt.err (!%p788_p4)
}
 0x289   :  { %594 = dma.vmem_to_hbm [thread:$0]  %s592_s18, 128, %s1082_s15, [#allocation4]   ;;  %vm568_vm4 = vcmp.gt.f32.partialorder %v478_v60, 20.0 }
 0x28a   :  { %s847_s1 = smov [#allocation5]  }
 0x28b   :  { %s601_s20 = sshll.u32 %s847_s1, 4  ;;  %s602_s20 = int_to_ptr.vmem [resolvable:$true] %s601_s20 }
 0x28c   :  { %s800_s21 = scalar_lea.vmem %s602_s20, 128  ;;  %p805_p6 = scmp.lt.s32.totalorder %s602_s20, %s602_s20 }
 0x28d   :  { %p801_p5 = scmp.ne.s32.totalorder %s602_s20, %s800_s21  ;;  %p806_p7 = scmp.lt.s32.totalorder %s800_s21, %s800_s21 }
 0x28f   :  { %p807_p8 = por %p806_p7, %p805_p6 }
 0x291   :  { %p808_p9 = pnand %p807_p8, %p801_p5 }
 0x293   :  { %v775_v19 = vpop.eup %774 }
 0x294   :  { %v777_v20 = vpop.eup %776  ;;  %v574_v21 = vmul.f32 0.6931472, %v775_v19 }
 0x295   :  { %v582_v22 = vadd.f32 1.0, %v777_v20 }
 0x296   :  { %v575_v23 = vsel %vm568_vm4, %v478_v60, %v574_v21 }
 0x297   :  { %778 = vrcp.f32 %v582_v22  ;;  %v576_v24 = vmax.f32 %v575_v23, 0.0001 }
 0x299   :  { %v577_v25 = vmin.f32 %v576_v24, 10000.0 }
 0x29b   :  { %578 = vst.msk [vmem:[#allocation5] sm:$0xff] %vm202_vm2, %v577_v25 }
 0x29c   :  { %811 = shalt.err (!%p808_p9)
}
 0x29d   :  { %604 = dma.vmem_to_hbm [thread:$0]  %s602_s20, 128, %s1083_s16, [#allocation6]  }
 0x29e   :  { %s848_s23 = smov [#allocation7]  }
 0x29f   :  { %s611_s3 = sshll.u32 %s848_s23, 4  ;;  %s612_s3 = int_to_ptr.vmem [resolvable:$true] %s611_s3 }
 0x2a0   :  { %s820_s24 = scalar_lea.vmem %s612_s3, 128  ;;  %p825_p11 = scmp.lt.s32.totalorder %s612_s3, %s612_s3 }
 0x2a1   :  { %p821_p10 = scmp.ne.s32.totalorder %s612_s3, %s820_s24  ;;  %p826_p12 = scmp.lt.s32.totalorder %s820_s24, %s820_s24 }
 0x2a3   :  { %p827_p13 = por %p826_p12, %p825_p11 }
 0x2a4   :  { %v779_v26 = vpop.eup %778 }
 0x2a5   :  { %584 = vst.msk [vmem:[#allocation7] sm:$0xff] %vm202_vm2, %v779_v26  ;;  %p828_p0 = pnand %p827_p13, %p821_p10 }
 0x2a7   :  { %831 = shalt.err (!%p828_p0)
}
 0x2a8   :  { %614 = dma.vmem_to_hbm [thread:$0]  %s612_s3, 128, %s1084_s17, [#allocation6]  }
 0x2a9   :  { %840 = dma.done.wait [#allocation4], 128  }
 0x2aa   :  { %841 = vsyncadd [#allocation4], 4294967168 }
 0x2ab   :  { %842 = dma.done.wait [#allocation6], 256  }
 0x2ac   :  { %843 = vsyncadd [#allocation6], 4294967040 }
 0x2ad   :  { %624 = vsyncpa [#allocation4], 1 }
 0x2ae   :  { %625 = vsyncpa [#allocation6], 1 }

</bundles_post_ra>
